<compile_context>
chip_gen: v7x
topology: tpu7x:2x2x1
jax: 0.10.0
libtpu: 0.0.40
codegen_flags: <defaults>
</compile_context>

<pallas_src>
import functools

import jax
import jax.numpy as jnp
from jax.experimental import pallas as pl
from jax.experimental.pallas import tpu as pltpu


def _round_up(a: int, b: int) -> int:
    return ((a + b - 1) // b) * b


# --------------------------------------------------------------------------
# Kernel: one (row-block i, K-block k) step of out = (adj @ x) / rowsum(adj)
# --------------------------------------------------------------------------
def _ave_kernel(adj_ref, x_ref, o_ref, *scratch, ones_col, block_k,
                x_resident, compute_dtype):
    # When the output is f32 it is resident across k, so accumulate in place.
    acc_ref = scratch[0] if scratch else o_ref
    k = pl.program_id(1)

    @pl.when(k == 0)
    def _init():
        acc_ref[...] = jnp.zeros_like(acc_ref)

    # adj streams from HBM in its storage dtype; per-tile cast (exact for 0/1).
    adj_tile = adj_ref[...].astype(compute_dtype)
    if x_resident:
        # x is fully VMEM-resident; pick the K slice for this step.
        x_tile = x_ref[pl.ds(k * block_k, block_k), :]
    else:
        x_tile = x_ref[...]

    # MXU matmul with f32 accumulation.  The ones column of x makes
    # acc[:, ones_col] the exact row-sum of adj (degree) for free.
    acc_ref[...] += jnp.dot(adj_tile, x_tile,
                            preferred_element_type=jnp.float32)

    @pl.when(k == pl.num_programs(1) - 1)
    def _finalize():
        acc = acc_ref[...]
        deg = acc[:, ones_col:ones_col + 1]        # == adj @ ones(N, 1)
        # Exact divide, once per output tile (matches torch's output.div).
        # Isolated / padded rows (degree == 0) give inf/nan like the reference;
        # padded rows are sliced off in the wrapper.
        o_ref[...] = (acc / deg).astype(o_ref.dtype)


# --------------------------------------------------------------------------
# Wrapper
# --------------------------------------------------------------------------
@functools.partial(jax.jit, static_argnames=("dropout", "training", "use_bf16"))
def avelayer(adj, x, key=None, *, dropout=0.5, training=False, use_bf16=True):
    """Pallas implementation of Avelayer.forward(input=x, adj=adj)."""
    N, F = x.shape
    assert adj.shape == (N, N)
    out_dtype = x.dtype
    compute_dtype = jnp.bfloat16 if use_bf16 else x.dtype

    # ---- dropout (F.dropout semantics: inverted dropout; identity in eval) ----
    # TODO(synk): mask is drawn with jax.random outside the kernel (TPU HW PRNG
    #             has no interpret lowering and never bit-matches torch's RNG);
    #             could be fused in-kernel via pltpu.prng_* on real hardware.
    if training and dropout > 0.0:
        keep = 1.0 - float(dropout)
        mask = jax.random.bernoulli(key, keep, x.shape)
        x = jnp.where(mask, x * (1.0 / keep), jnp.zeros_like(x))

    # ---- tile selection ----
    f_pad = _round_up(F + 1, 128)          # +1 lane carries the ones column
    tm = min(512, _round_up(N, 8))
    # Keep the double-buffered f32 output/acc tile under ~16 MiB (v7x VMEM).
    while tm > 64 and 2 * tm * f_pad * 4 > 16 * 1024 * 1024:
        tm //= 2
    tk = min(1024, _round_up(N, 128))
    n_rows = _round_up(N, tm)
    n_cols = _round_up(N, tk)

    # ---- operand prep ----
    # adj: pad only when needed; NO host-side dtype pass (cast is in-kernel).
    # TODO(synk): for large non-tile-aligned N, mask the tail K tile in-kernel
    #             (broadcasted_iota < N) instead of materializing a padded copy.
    if adj.shape != (n_rows, n_cols):
        adj_p = jnp.pad(adj, ((0, n_rows - N), (0, n_cols - N)))
    else:
        adj_p = adj

    # x is small ([N, F]); pad to [n_cols, f_pad] in compute dtype + ones col.
    x_p = jnp.zeros((n_cols, f_pad), dtype=compute_dtype)
    x_p = x_p.at[:N, :F].set(x.astype(compute_dtype))
    x_p = x_p.at[:N, F].set(jnp.ones((N,), dtype=compute_dtype))

    itemsize = jnp.dtype(compute_dtype).itemsize
    x_resident = n_cols * f_pad * itemsize <= 8 * 1024 * 1024
    use_acc_scratch = out_dtype != jnp.float32

    if x_resident:
        x_spec = pl.BlockSpec((n_cols, f_pad), lambda i, k: (0, 0))  # DMA'd once
    else:
        x_spec = pl.BlockSpec((tk, f_pad), lambda i, k: (k, 0))

    scratch_shapes = (
        [pltpu.VMEM((tm, f_pad), jnp.float32)] if use_acc_scratch else [])

    # VMEM budget estimate (double-buffered inputs/outputs + optional scratch).
    vmem_est = (2 * tm * tk * adj_p.dtype.itemsize
                + 2 * (n_cols if x_resident else tk) * f_pad * itemsize
                + 2 * tm * f_pad * jnp.dtype(out_dtype).itemsize
                + (tm * f_pad * 4 if use_acc_scratch else 0))
    vmem_limit = int(min(max(32 * 1024 * 1024, vmem_est * 3 // 2),
                         96 * 1024 * 1024))

    kernel = functools.partial(
        _ave_kernel, ones_col=F, block_k=tk,
        x_resident=x_resident, compute_dtype=compute_dtype)

    grid = (n_rows // tm, n_cols // tk)
    out_p = pl.pallas_call(
        kernel,
        out_shape=jax.ShapeDtypeStruct((n_rows, f_pad), out_dtype),
        grid_spec=pltpu.PrefetchScalarGridSpec(
            num_scalar_prefetch=0,
            grid=grid,
            in_specs=[
                pl.BlockSpec((tm, tk), lambda i, k: (i, k)),   # adj tile
                x_spec,                                        # x tile / resident
            ],
            out_specs=pl.BlockSpec((tm, f_pad), lambda i, k: (i, 0)),
            scratch_shapes=scratch_shapes,
        ),
        compiler_params=pltpu.CompilerParams(
            dimension_semantics=("parallel", "arbitrary"),
            vmem_limit_bytes=vmem_limit,
        ),
    )(adj_p, x_p)

    return out_p[:N, :F]


if __name__ == "__main__":
    key = jax.random.PRNGKey(0)
    k_adj, k_x, k_drop = jax.random.split(key, 3)

    N, F = 16, 32  # small graph: 16 nodes, 32 features

    # Random binary adjacency with self-loops (so every degree >= 1).
    adj = (jax.random.uniform(k_adj, (N, N)) > 0.5).astype(jnp.float32)
    adj = jnp.clip(adj + jnp.eye(N, dtype=jnp.float32), 0.0, 1.0)

    x = jax.random.normal(k_x, (N, F), dtype=jnp.float32)

    # Eval-mode forward (dropout is identity), matching the module in .eval().
    out = avelayer(adj, x, dropout=0.5, training=False)
    out = jax.block_until_ready(out)
    assert out.shape == (N, F)

    # Pure-JAX reference for the eval path (x rounded to bf16 so the check
    # isolates kernel error from the intentional bf16 operand cast).
    x_bf = x.astype(jnp.bfloat16).astype(jnp.float32)
    degree = adj @ jnp.ones((N, 1), dtype=jnp.float32)
    ref = (adj @ x_bf) / degree
    assert jnp.allclose(out, ref, atol=1e-2, rtol=1e-2), "mismatch vs reference"

    # Looser check against the pure-f32 reference as well.
    ref_f32 = (adj @ x) / degree
    assert jnp.allclose(out, ref_f32, atol=5e-2, rtol=5e-2)

    # Training-mode smoke test (jax.random dropout mask applied pre-kernel).
    out_tr = avelayer(adj, x, k_drop, dropout=0.5, training=True)
    out_tr = jax.block_until_ready(out_tr)
    assert out_tr.shape == (N, F)
    assert bool(jnp.all(jnp.isfinite(out_tr)))

    print("KERNEL_OK")
</pallas_src>

<mosaic_0001>
module attributes {stable_mosaic.version = 11 : i64} {
  func.func @_ave_kernel(%arg0: i32, %arg1: i32, %arg2: memref<16x128xf32, #tpu.memory_space<vmem>>, %arg3: memref<128x128xbf16, #tpu.memory_space<vmem>>, %arg4: memref<16x128xf32, #tpu.memory_space<vmem>>) attributes {dimension_semantics = [#tpu.dimension_semantics<parallel>, #tpu.dimension_semantics<arbitrary>], iteration_bounds = array<i64: 1, 1>, scalar_prefetch = 0 : i64, scratch_operands = 0 : i64, tpu.core_type = #tpu.core_type<tc>, window_params = [{transform_indices = @transform_0, window_bounds = array<i64: 16, 128>}, {pipeline_mode = #tpu.pipeline_mode<synchronous>, transform_indices = @transform_1, window_bounds = array<i64: 128, 128>}, {transform_indices = @transform_2, window_bounds = array<i64: 16, 128>}]} {
    %c0_i32 = arith.constant 0 : i32
    %0 = arith.cmpi eq, %arg1, %c0_i32 : i32
    %1 = arith.extui %0 : i1 to i32
    %c0_i32_0 = arith.constant 0 : i32
    %2 = arith.cmpi ne, %1, %c0_i32_0 : i32
    scf.if %2 {
      %cst_9 = arith.constant 0.000000e+00 : f32
      %15 = vector.broadcast %cst_9 : f32 to vector<16x128xf32>
      %c0_10 = arith.constant 0 : index
      %c0_11 = arith.constant 0 : index
      %16 = vector.load %arg4[%c0_10, %c0_11] : memref<16x128xf32, #tpu.memory_space<vmem>>, vector<16x128xf32>
      tpu.vector_store %arg4[%c0_10, %c0_11], %15 {strides = array<i32>} : memref<16x128xf32, #tpu.memory_space<vmem>>, vector<16x128xf32>,
    } else {
    }
    %c0 = arith.constant 0 : index
    %c0_1 = arith.constant 0 : index
    %3 = vector.load %arg2[%c0, %c0_1] : memref<16x128xf32, #tpu.memory_space<vmem>>, vector<16x128xf32>
    %4 = arith.truncf %3 : vector<16x128xf32> to vector<16x128xbf16>
    %c128_i32 = arith.constant 128 : i32
    %5 = arith.muli %arg1, %c128_i32 : i32
    %6 = arith.index_cast %5 : i32 to index
    %c0_2 = arith.constant 0 : index
    %7 = vector.load %arg3[%6, %c0_2] : memref<128x128xbf16, #tpu.memory_space<vmem>>, vector<128x128xbf16>
    %c0_3 = arith.constant 0 : index
    %c0_4 = arith.constant 0 : index
    %8 = vector.load %arg4[%c0_3, %c0_4] : memref<16x128xf32, #tpu.memory_space<vmem>>, vector<16x128xf32>
    %cst = arith.constant dense<0.000000e+00> : vector<16x128xf32>
    %9 = tpu.matmul %4, %7, %cst {dimension_numbers = #tpu.dot_dimension_numbers<[1], [0], [0], [1], [0, 0, 1, 1], [], []>} : vector<16x128xbf16>, vector<128x128xbf16>, vector<16x128xf32> -> vector<16x128xf32>
    %10 = arith.addf %8, %9 : vector<16x128xf32>
    %c0_5 = arith.constant 0 : index
    %c0_6 = arith.constant 0 : index
    %11 = vector.load %arg4[%c0_5, %c0_6] : memref<16x128xf32, #tpu.memory_space<vmem>>, vector<16x128xf32>
    tpu.vector_store %arg4[%c0_5, %c0_6], %10 {strides = array<i32>} : memref<16x128xf32, #tpu.memory_space<vmem>>, vector<16x128xf32>,
    %c0_i32_7 = arith.constant 0 : i32
    %12 = arith.cmpi eq, %arg1, %c0_i32_7 : i32
    %13 = arith.extui %12 : i1 to i32
    %c0_i32_8 = arith.constant 0 : i32
    %14 = arith.cmpi ne, %13, %c0_i32_8 : i32
    scf.if %14 {
      %c0_9 = arith.constant 0 : index
      %c0_10 = arith.constant 0 : index
      %15 = vector.load %arg4[%c0_9, %c0_10] : memref<16x128xf32, #tpu.memory_space<vmem>>, vector<16x128xf32>
      %16 = vector.extract_strided_slice %15 {offsets = [0, 32], sizes = [16, 1], strides = [1, 1]} : vector<16x128xf32> to vector<16x1xf32>
      %17 = vector.broadcast %16 : vector<16x1xf32> to vector<16x128xf32>
      %18 = arith.divf %15, %17 : vector<16x128xf32>
      %c0_11 = arith.constant 0 : index
      %c0_12 = arith.constant 0 : index
      %19 = vector.load %arg4[%c0_11, %c0_12] : memref<16x128xf32, #tpu.memory_space<vmem>>, vector<16x128xf32>
      tpu.vector_store %arg4[%c0_11, %c0_12], %18 {strides = array<i32>} : memref<16x128xf32, #tpu.memory_space<vmem>>, vector<16x128xf32>,
    } else {
    }
    return
  }
  func.func @transform_0(%arg0: i32, %arg1: i32) -> (i32, i32) {
    %c0_i32 = arith.constant 0 : i32
    return %arg0, %arg1 : i32, i32
  }
  func.func @transform_1(%arg0: i32, %arg1: i32) -> (i32, i32) {
    %c0_i32 = arith.constant 0 : i32
    %c0_i32_0 = arith.constant 0 : i32
    %c0_i32_1 = arith.constant 0 : i32
    return %c0_i32, %c0_i32_0 : i32, i32
  }
  func.func @transform_2(%arg0: i32, %arg1: i32) -> (i32, i32) {
    %c0_i32 = arith.constant 0 : i32
    %c0_i32_0 = arith.constant 0 : i32
    return %arg0, %c0_i32 : i32, i32
  }
}

</mosaic_0001>

<bundles_post_ra>
// kernel: avelayer.1
= control target key start
LH: loop header
LB: loop body
LE: loop exit
PB: predicated region body
PF: predicated region fallthrough
CT: control target
= control target key end

     0   :  { %v257_v1 = vmov 0.0   ;;  %vm258_vm0 = vmmov 0   ;;  %s320_s0 = inlined_call_operand.vmem [shape: f32[16,128], index: 0, kind: input, shape index: {}]   ;;  %s321_s1 = inlined_call_operand.vmem [shape: bf16[128,128], index: 1, kind: input, shape index: {}]   ;;  %s322_s2 = inlined_call_operand.hbm [shape: f32[16,128], index: 2, kind: output, shape index: {}]  }
   0x1   :  { %v221_v0 = vld [vmem:[%s321_s1] sm:$0xff]   ;;  %194 = vmatprep.subr.bf16.mxu0 %v257_v1  ;;  %v222_v2 = vld [vmem:[%s321_s1 + $0x8] sm:$0xff]   ;;  %210 = vmatprep.mubr.msk.bf16.mxu0 %vm258_vm0, %v257_v1  ;;  %v223_v3 = vld [vmem:[%s321_s1 + $0x10] sm:$0xff]  }
   0x2   :  { %195 = vmatpush3.bf16.msra.mxu0 %v221_v0 }
   0x3   :  { %196 = vmatprep.subr.bf16.mxu0 %v257_v1 }
   0x6   :  { %197 = vmatpush3.bf16.msra.mxu0 %v222_v2 }
   0x7   :  { %198 = vmatprep.subr.bf16.mxu0 %v257_v1 }
   0x8   :  { %7 = vsyncpa [#allocation3], 0  ;;  %v224_v4 = vld [vmem:[%s321_s1 + $0x18] sm:$0xff]   ;;  %v225_v5 = vld [vmem:[%s321_s1 + $0x20] sm:$0xff]   ;;  %v259_v12 = vmov 32  }
   0x9   :  { %v226_v6 = vld [vmem:[%s321_s1 + $0x28] sm:$0xff]   ;;  %v227_v7 = vld [vmem:[%s321_s1 + $0x30] sm:$0xff]   ;;  %v228_v8 = vld [vmem:[%s321_s1 + $0x38] sm:$0xff]   ;;  %220 = vset.pattern.permute.xlu0 %v259_v12  ;;  %s260_s1 = smov [#allocation2]  }
   0xa   :  { %199 = vmatpush3.bf16.msra.mxu0 %v223_v3  ;;  %v19_v9 = vld [vmem:[%s320_s0] sm:$0xff]  ;;  %v20_v10 = vld [vmem:[%s320_s0 + $0x8] sm:$0xff]  ;;  %s164_s0 = sshll.u32 %s260_s1, 4  ;;  %s165_s0 = int_to_ptr.vmem [resolvable:$true] %s164_s0 }
   0xb   :  { %200 = vmatprep.subr.bf16.mxu0 %v257_v1  ;;  %v21_v11 = vpack.c.bf16 %v20_v10, %v19_v9  ;;  %s233_s29 = scalar_lea.vmem %s165_s0, 256  ;;  %p238_p1 = scmp.lt.s32.totalorder %s165_s0, %s165_s0 }
   0xc   :  { %p234_p0 = scmp.ne.s32.totalorder %s165_s0, %s233_s29  ;;  %p239_p2 = scmp.lt.s32.totalorder %s233_s29, %s233_s29 }
   0xe   :  { %201 = vmatpush3.bf16.msra.mxu0 %v224_v4  ;;  %p240_p3 = por %p239_p2, %p238_p1 }
   0xf   :  { %202 = vmatprep.subr.bf16.mxu0 %v257_v1 }
  0x10   :  { %p241_p4 = pnand %p240_p3, %p234_p0 }
  0x12   :  { %203 = vmatpush3.bf16.msra.mxu0 %v225_v5 }
  0x13   :  { %204 = vmatprep.subr.bf16.mxu0 %v257_v1 }
  0x16   :  { %205 = vmatpush3.bf16.msra.mxu0 %v226_v6 }
  0x17   :  { %206 = vmatprep.subr.bf16.mxu0 %v257_v1 }
  0x1a   :  { %207 = vmatpush3.bf16.msra.mxu0 %v227_v7 }
  0x1b   :  { %208 = vmatprep.subr.bf16.mxu0 %v257_v1 }
  0x1e   :  { %209 = vmatpush3.bf16.msra.mxu0 %v228_v8 }
  0x21   :  { %211 = vmatmul.mubr.bf16.vlgmr.msra.gmra.mrb[0].mxu0 %v21_v11 }
  0xf4   :  { %v127_v13 = vpop.f32.mrb[0].mxu0 }
  0xf5   :  { %v212_v14 = vpop.f32.mrb[1].mxu0  ;;  %145 = vperm.xlu0 %220, %v127_v13  }
  0xf6   :  { %v130_v15 = vpop.f32.mrb[2].mxu0 }
  0xf7   :  { %v213_v16 = vpop.f32.mrb[3].mxu0 }
  0xf9   :  { %150 = vperm.xlu0 %220, %v130_v15  }
 0x174   :  { %v146_v17 = vpop.permute.xlu0 %145 }
 0x175   :  { %229 = vrcp.f32 %v146_v17 }
 0x178   :  { %v151_v18 = vpop.permute.xlu0 %150 }
 0x179   :  { %231 = vrcp.f32 %v151_v18 }
 0x17f   :  { %v230_v19 = vpop.eup %229 }
 0x180   :  { %v154_v20 = vmul.f32 %v230_v19, %v127_v13 }
 0x182   :  { %157 = vst [vmem:[#allocation2] sm:$0xff] %v154_v20 }
 0x183   :  { %v232_v21 = vpop.eup %231 }
 0x184   :  { %v156_v22 = vmul.f32 %v232_v21, %v130_v15 }
 0x186   :  { %158 = vst [vmem:[#allocation2 + $0x8] sm:$0xff] %v156_v22 }
 0x187   :  { %244 = shalt.err (!%p241_p4)
}
 0x188   :  { %s245_s4 = scalar_lea.hbm %s322_s2, 256 }
 0x189   :  { %p246_p5 = scmp.ne.s32.totalorder %s322_s2, %s245_s4  ;;  %p249_p6 = scmp.lt.u32.totalorder %s245_s4, %s322_s2 }
 0x18b   :  { %p251_p7 = pnand %p249_p6, %p246_p5 }
 0x18d   :  { %254 = shalt.err (!%p251_p7)
}
 0x18e   :  { %s261_s9 = smov 128   ;;  %s262_s10 = smov 8  }
 0x18f   :  { %170 = dma.vmem_to_hbm [thread:$0]  %s165_s0, 256, %s322_s2, [#allocation3], %s261_s9, %s261_s9, %s262_s10  }
 0x190   :  { %255 = dma.done.wait [#allocation3], 256  }
 0x191   :  { %256 = vsyncadd [#allocation3], 4294967040 }
 0x192   :  { %174 = vsyncpa [#allocation3], 1 }

</bundles_post_ra>
